<compile_context>
chip_gen: v6e
topology: v6e:2x2x1
jax: 0.10.0
libtpu: 0.0.40
codegen_flags: <defaults>
</compile_context>

<pallas_src>
import math
import functools

import jax
import jax.numpy as jnp
from jax.experimental import pallas as pl
from jax.experimental.pallas import tpu as pltpu


def _round_up(a, m):
    return (a + m - 1) // m * m


def _apply_activation(y, activation):
    if activation == 'relu':
        return jnp.maximum(y, 0.0)
    if activation == 'sigmoid':
        return jax.nn.sigmoid(y)
    if activation == 'tanh':
        return jnp.tanh(y)
    return y  # '' -> identity


def _vmem_budget_bytes():
    """~75% of this generation's per-core VMEM (96 MiB v5e/v6e, 48 MiB v7x)."""
    try:
        cap = int(pltpu.get_tpu_info().vmem_capacity_bytes)
    except Exception:
        cap = 64 * 1024 * 1024  # conservative fallback (v7x-sized)
    return (cap * 3) // 4


def _pick_tile(padded, cap):
    """Largest multiple of 128 that divides `padded` and is <= cap."""
    best = 128
    t = 256
    top = min(cap, padded)
    while t <= top:
        if padded % t == 0:
            best = t
        t += 128
    return best


def _linear_kernel(x_ref, w_ref, bgb_ref, o_ref, acc_ref, *,
                   activation, eps, n_rows, tk, x_resident, batchnorm):
    """One (F-tile j, K-tile k) grid step.

    x:   (N, k_pad) resident  OR  (N, tk) streamed        (bf16 MXU operand)
    w:   (tk, tn)                                         (bf16 MXU operand)
    bgb: (3, tn) = [bias; gamma; beta]  (or (1, tn) = [bias]), f32
    o:   (N, tn) output dtype
    acc: (N, tn) f32 scratch, resident across the K (reduction) axis
    """
    k = pl.program_id(1)

    if x_resident:
        off = pl.multiple_of(k * tk, 128)
        x_tile = x_ref[:, pl.ds(off, tk)]
    else:
        x_tile = x_ref[...]

    partial = jax.lax.dot_general(
        x_tile, w_ref[...],
        dimension_numbers=(((1,), (0,)), ((), ())),
        preferred_element_type=jnp.float32)

    @pl.when(k == 0)
    def _():
        acc_ref[...] = partial          # direct write: no zero-init store

    @pl.when(k > 0)
    def _():
        acc_ref[...] += partial

    @pl.when(k == pl.num_programs(1) - 1)
    def _():
        bgb = bgb_ref[...]              # (nvec, tn) f32
        y = acc_ref[...] + bgb[0:1, :]  # bias
        y = _apply_activation(y, activation)
        if batchnorm:
            # Two-pass batch statistics (training mode, biased variance), f32.
            inv_n = 1.0 / n_rows
            mean = jnp.sum(y, axis=0, keepdims=True) * inv_n
            centered = y - mean
            var = jnp.sum(centered * centered, axis=0, keepdims=True) * inv_n
            y = centered * jax.lax.rsqrt(var + eps)
            y = y * bgb[1:2, :] + bgb[2:3, :]   # gamma, beta
        o_ref[...] = y.astype(o_ref.dtype)


def prepare_params(w, b, gamma=None, beta=None, *, mxu_dtype=jnp.bfloat16):
    """One-time prep: transpose+pad W (stored in MXU dtype), pack bias/gamma/beta.

    w: (out_f, in_f); b/gamma/beta: (out_f,).
    """
    out_f, in_f = w.shape
    k_pad = _round_up(in_f, 128)
    f_pad = _round_up(out_f, 128)
    wt = jnp.pad(jnp.transpose(w), ((0, k_pad - in_f), (0, f_pad - out_f)))
    wt = wt.astype(mxu_dtype)                               # (k_pad, f_pad)
    rows = [jnp.pad(b.astype(jnp.float32), (0, f_pad - out_f))]
    if gamma is not None:
        rows.append(jnp.pad(gamma.astype(jnp.float32), (0, f_pad - out_f),
                            constant_values=1.0))
        rows.append(jnp.pad(beta.astype(jnp.float32), (0, f_pad - out_f)))
    bgb = jnp.stack(rows, axis=0)                           # (1 or 3, f_pad) f32
    return {'wt': wt, 'bgb': bgb, 'in_f': in_f, 'out_f': out_f,
            'k_pad': k_pad, 'f_pad': f_pad, 'mxu_dtype': mxu_dtype}


def linear_forward(x, params, *, activation='', batchnorm=True, eps=1e-5):
    """Pallas equivalent of Linear.forward. x: (N, in_f) -> (N, out_f)."""
    n, in_f = x.shape
    assert in_f == params['in_f']
    out_f, k_pad, f_pad = params['out_f'], params['k_pad'], params['f_pad']
    wt, bgb, mxu_dtype = params['wt'], params['bgb'], params['mxu_dtype']
    nvec = bgb.shape[0]
    if batchnorm:
        assert nvec == 3, "prepare_params needs gamma/beta for batchnorm=True"

    out_dtype = x.dtype
    xbytes = jnp.dtype(mxu_dtype).itemsize
    wbytes = jnp.dtype(mxu_dtype).itemsize
    obytes = jnp.dtype(out_dtype).itemsize

    budget = _vmem_budget_bytes()

    def pick(tn_cap, tk_cap):
        tn = _pick_tile(f_pad, tn_cap)
        # Give the megacore 'parallel' F axis >= 2 tiles when possible (v7x 2 TCs).
        if f_pad // tn < 2 and f_pad >= 256:
            tn = _pick_tile(f_pad, f_pad // 2)
        tk = _pick_tile(k_pad, tk_cap)
        return tn, tk

    def estimate(tn, tk, resident):
        return (2 * n * (k_pad if resident else tk) * xbytes   # X (dbl-buffered)
                + 2 * tk * tn * wbytes                         # W
                + 2 * nvec * tn * 4                            # bias/gamma/beta
                + 2 * n * tn * obytes                          # output
                + n * tn * 4)                                  # f32 accumulator

    tn_cap, tk_cap = 512, 1024
    tn, tk = pick(tn_cap, tk_cap)
    while estimate(tn, tk, False) > budget and (tk_cap > 128 or tn_cap > 128):
        if tk_cap >= tn_cap and tk_cap > 128:
            tk_cap //= 2
        else:
            tn_cap //= 2
        tn, tk = pick(tn_cap, tk_cap)
    # TODO(synk): if the estimate still exceeds the budget (huge N), tile N and
    # switch BN to partial s1/s2 accumulation across N tiles.

    # Resident X only pays off when K is actually tiled (streamed spec already
    # fetches X exactly once if there is a single K tile).
    x_resident = (k_pad // tk > 1) and (estimate(tn, tk, True) <= budget)
    est = estimate(tn, tk, x_resident)

    x_p = jnp.pad(x, ((0, 0), (0, k_pad - in_f))).astype(mxu_dtype)

    grid = (f_pad // tn, k_pad // tk)

    if x_resident:
        x_spec = pl.BlockSpec((n, k_pad), lambda j, k: (0, 0))
    else:
        x_spec = pl.BlockSpec((n, tk), lambda j, k: (0, k))
    w_spec = pl.BlockSpec((tk, tn), lambda j, k: (k, j))
    bgb_spec = pl.BlockSpec((nvec, tn), lambda j, k: (0, j))
    out_spec = pl.BlockSpec((n, tn), lambda j, k: (0, j))

    vmem_limit = int(min(budget, max(int(est * 1.5) + (4 << 20), 16 << 20)))

    cost = pl.CostEstimate(
        flops=2 * n * k_pad * f_pad,
        transcendentals=(n * f_pad if activation in ('sigmoid', 'tanh') else 0)
                        + (f_pad if batchnorm else 0),
        bytes_accessed=(n * k_pad * xbytes + k_pad * f_pad * wbytes
                        + n * f_pad * obytes + nvec * f_pad * 4))

    kernel = functools.partial(
        _linear_kernel, activation=activation, eps=eps, n_rows=n,
        tk=tk, x_resident=x_resident, batchnorm=batchnorm)

    out_p = pl.pallas_call(
        kernel,
        out_shape=jax.ShapeDtypeStruct((n, f_pad), out_dtype),
        grid_spec=pltpu.PrefetchScalarGridSpec(
            num_scalar_prefetch=0,
            grid=grid,
            in_specs=[x_spec, w_spec, bgb_spec],
            out_specs=out_spec,
            scratch_shapes=[pltpu.VMEM((n, tn), jnp.float32)]),
        compiler_params=pltpu.CompilerParams(
            dimension_semantics=("parallel", "arbitrary"),
            vmem_limit_bytes=vmem_limit),
        cost_estimate=cost,
    )(x_p, wt, bgb)

    return out_p[:, :out_f]


def init_params(key, in_features, out_features):
    """Deterministic init matching nn.Linear defaults (uniform +/- 1/sqrt(in))."""
    k_w, k_b = jax.random.split(key)
    bound = 1.0 / math.sqrt(in_features)
    w = jax.random.uniform(k_w, (out_features, in_features), jnp.float32,
                           minval=-bound, maxval=bound)
    b = jax.random.uniform(k_b, (out_features,), jnp.float32,
                           minval=-bound, maxval=bound)
    gamma = jnp.ones((out_features,), jnp.float32)   # BatchNorm1d weight
    beta = jnp.zeros((out_features,), jnp.float32)   # BatchNorm1d bias
    return w, b, gamma, beta


if __name__ == "__main__":
    key = jax.random.PRNGKey(0)
    k_x, k_p = jax.random.split(key)

    batch, in_features, out_features = 8, 32, 32
    x = jax.random.normal(k_x, (batch, in_features), jnp.float32)
    w, b, gamma, beta = init_params(k_p, in_features, out_features)

    # Reference uses the same bf16-rounded MXU operands, f32 everywhere else.
    x_bf = x.astype(jnp.bfloat16).astype(jnp.float32)
    w_bf = w.astype(jnp.bfloat16).astype(jnp.float32)

    # Path 1: relu + BatchNorm1d (training-mode stats)
    params_bn = prepare_params(w, b, gamma, beta)
    out = linear_forward(x, params_bn, activation='relu', batchnorm=True)
    out = jax.block_until_ready(out)

    y_ref = x_bf @ w_bf.T + b
    y_ref = jnp.maximum(y_ref, 0.0)
    mean = jnp.mean(y_ref, axis=0, keepdims=True)
    var = jnp.mean((y_ref - mean) ** 2, axis=0, keepdims=True)
    ref = (y_ref - mean) / jnp.sqrt(var + 1e-5) * gamma + beta
    assert jnp.allclose(out, ref, atol=5e-3, rtol=5e-3), (
        float(jnp.max(jnp.abs(out - ref))))

    # Path 2: identity activation, no batchnorm
    params_nobn = prepare_params(w, b)
    out2 = linear_forward(x, params_nobn, activation='', batchnorm=False)
    out2 = jax.block_until_ready(out2)
    ref2 = x_bf @ w_bf.T + b
    assert jnp.allclose(out2, ref2, atol=5e-3, rtol=5e-3), (
        float(jnp.max(jnp.abs(out2 - ref2))))

    print("KERNEL_OK")
</pallas_src>

<mosaic_0001>
module attributes {stable_mosaic.version = 11 : i64} {
  func.func @_linear_kernel(%arg0: i32, %arg1: i32, %arg2: memref<8x128xbf16, #tpu.memory_space<vmem>>, %arg3: memref<128x128xbf16, #tpu.memory_space<vmem>>, %arg4: memref<3x128xf32, #tpu.memory_space<vmem>>, %arg5: memref<8x128xf32, #tpu.memory_space<vmem>>, %arg6: memref<8x128xf32, #tpu.memory_space<vmem>>) attributes {dimension_semantics = [#tpu.dimension_semantics<parallel>, #tpu.dimension_semantics<arbitrary>], iteration_bounds = array<i64: 1, 1>, scalar_prefetch = 0 : i64, scratch_operands = 1 : i64, tpu.core_type = #tpu.core_type<tc>, window_params = [{transform_indices = @transform_0, window_bounds = array<i64: 8, 128>}, {transform_indices = @transform_1, window_bounds = array<i64: 128, 128>}, {transform_indices = @transform_2, window_bounds = array<i64: 3, 128>}, {transform_indices = @transform_3, window_bounds = array<i64: 8, 128>}]} {
    %c0 = arith.constant 0 : index
    %c0_0 = arith.constant 0 : index
    %0 = vector.load %arg2[%c0, %c0_0] : memref<8x128xbf16, #tpu.memory_space<vmem>>, vector<8x128xbf16>
    %c0_1 = arith.constant 0 : index
    %c0_2 = arith.constant 0 : index
    %1 = vector.load %arg3[%c0_1, %c0_2] : memref<128x128xbf16, #tpu.memory_space<vmem>>, vector<128x128xbf16>
    %cst = arith.constant dense<0.000000e+00> : vector<8x128xf32>
    %2 = tpu.matmul %0, %1, %cst {dimension_numbers = #tpu.dot_dimension_numbers<[1], [0], [0], [1], [0, 0, 1, 1], [], []>} : vector<8x128xbf16>, vector<128x128xbf16>, vector<8x128xf32> -> vector<8x128xf32>
    %c0_i32 = arith.constant 0 : i32
    %3 = arith.cmpi eq, %arg1, %c0_i32 : i32
    %4 = arith.extui %3 : i1 to i32
    %c0_i32_3 = arith.constant 0 : i32
    %5 = arith.cmpi ne, %4, %c0_i32_3 : i32
    scf.if %5 {
      %c0_8 = arith.constant 0 : index
      %c0_9 = arith.constant 0 : index
      %12 = vector.load %arg6[%c0_8, %c0_9] : memref<8x128xf32, #tpu.memory_space<vmem>>, vector<8x128xf32>
      tpu.vector_store %arg6[%c0_8, %c0_9], %2 {strides = array<i32>} : memref<8x128xf32, #tpu.memory_space<vmem>>, vector<8x128xf32>,
    } else {
    }
    %c0_i32_4 = arith.constant 0 : i32
    %6 = arith.cmpi sgt, %arg1, %c0_i32_4 : i32
    %7 = arith.extui %6 : i1 to i32
    %c0_i32_5 = arith.constant 0 : i32
    %8 = arith.cmpi ne, %7, %c0_i32_5 : i32
    scf.if %8 {
      %c0_8 = arith.constant 0 : index
      %c0_9 = arith.constant 0 : index
      %12 = vector.load %arg6[%c0_8, %c0_9] : memref<8x128xf32, #tpu.memory_space<vmem>>, vector<8x128xf32>
      %13 = arith.addf %12, %2 : vector<8x128xf32>
      %c0_10 = arith.constant 0 : index
      %c0_11 = arith.constant 0 : index
      %14 = vector.load %arg6[%c0_10, %c0_11] : memref<8x128xf32, #tpu.memory_space<vmem>>, vector<8x128xf32>
      tpu.vector_store %arg6[%c0_10, %c0_11], %13 {strides = array<i32>} : memref<8x128xf32, #tpu.memory_space<vmem>>, vector<8x128xf32>,
    } else {
    }
    %c0_i32_6 = arith.constant 0 : i32
    %9 = arith.cmpi eq, %arg1, %c0_i32_6 : i32
    %10 = arith.extui %9 : i1 to i32
    %c0_i32_7 = arith.constant 0 : i32
    %11 = arith.cmpi ne, %10, %c0_i32_7 : i32
    scf.if %11 {
      %c0_8 = arith.constant 0 : index
      %c0_9 = arith.constant 0 : index
      %12 = vector.load %arg4[%c0_8, %c0_9] : memref<3x128xf32, #tpu.memory_space<vmem>>, vector<3x128xf32>
      %c0_10 = arith.constant 0 : index
      %c0_11 = arith.constant 0 : index
      %13 = vector.load %arg6[%c0_10, %c0_11] : memref<8x128xf32, #tpu.memory_space<vmem>>, vector<8x128xf32>
      %14 = vector.extract_strided_slice %12 {offsets = [0, 0], sizes = [1, 128], strides = [1, 1]} : vector<3x128xf32> to vector<1x128xf32>
      %15 = vector.broadcast %14 : vector<1x128xf32> to vector<8x128xf32>
      %16 = arith.addf %13, %15 : vector<8x128xf32>
      %cst_12 = arith.constant 0.000000e+00 : f32
      %17 = vector.broadcast %cst_12 : f32 to vector<8x128xf32>
      %18 = arith.maximumf %16, %17 : vector<8x128xf32>
      %cst_13 = arith.constant dense<0.000000e+00> : vector<128xf32>
      %19 = vector.multi_reduction <add>, %18, %cst_13 [0] : vector<8x128xf32> to vector<128xf32>
      %20 = vector.shape_cast %19 : vector<128xf32> to vector<1x128xf32>
      %cst_14 = arith.constant 1.250000e-01 : f32
      %21 = vector.broadcast %cst_14 : f32 to vector<1x128xf32>
      %22 = arith.mulf %20, %21 : vector<1x128xf32>
      %23 = vector.broadcast %22 : vector<1x128xf32> to vector<8x128xf32>
      %24 = arith.subf %18, %23 : vector<8x128xf32>
      %25 = arith.mulf %24, %24 : vector<8x128xf32>
      %cst_15 = arith.constant dense<0.000000e+00> : vector<128xf32>
      %26 = vector.multi_reduction <add>, %25, %cst_15 [0] : vector<8x128xf32> to vector<128xf32>
      %27 = vector.shape_cast %26 : vector<128xf32> to vector<1x128xf32>
      %cst_16 = arith.constant 1.250000e-01 : f32
      %28 = vector.broadcast %cst_16 : f32 to vector<1x128xf32>
      %29 = arith.mulf %27, %28 : vector<1x128xf32>
      %cst_17 = arith.constant 9.99999974E-6 : f32
      %30 = vector.broadcast %cst_17 : f32 to vector<1x128xf32>
      %31 = arith.addf %29, %30 : vector<1x128xf32>
      %32 = math.rsqrt %31 : vector<1x128xf32>
      %33 = vector.broadcast %32 : vector<1x128xf32> to vector<8x128xf32>
      %34 = arith.mulf %24, %33 : vector<8x128xf32>
      %35 = vector.extract_strided_slice %12 {offsets = [1, 0], sizes = [1, 128], strides = [1, 1]} : vector<3x128xf32> to vector<1x128xf32>
      %36 = vector.broadcast %35 : vector<1x128xf32> to vector<8x128xf32>
      %37 = arith.mulf %34, %36 : vector<8x128xf32>
      %38 = vector.extract_strided_slice %12 {offsets = [2, 0], sizes = [1, 128], strides = [1, 1]} : vector<3x128xf32> to vector<1x128xf32>
      %39 = vector.broadcast %38 : vector<1x128xf32> to vector<8x128xf32>
      %40 = arith.addf %37, %39 : vector<8x128xf32>
      %c0_18 = arith.constant 0 : index
      %c0_19 = arith.constant 0 : index
      %41 = vector.load %arg5[%c0_18, %c0_19] : memref<8x128xf32, #tpu.memory_space<vmem>>, vector<8x128xf32>
      tpu.vector_store %arg5[%c0_18, %c0_19], %40 {strides = array<i32>} : memref<8x128xf32, #tpu.memory_space<vmem>>, vector<8x128xf32>,
    } else {
    }
    return
  }
  func.func @transform_0(%arg0: i32, %arg1: i32) -> (i32, i32) {
    %c0_i32 = arith.constant 0 : i32
    %c0_i32_0 = arith.constant 0 : i32
    return %c0_i32, %arg1 : i32, i32
  }
  func.func @transform_1(%arg0: i32, %arg1: i32) -> (i32, i32) {
    %c0_i32 = arith.constant 0 : i32
    return %arg1, %arg0 : i32, i32
  }
  func.func @transform_2(%arg0: i32, %arg1: i32) -> (i32, i32) {
    %c0_i32 = arith.constant 0 : i32
    %c0_i32_0 = arith.constant 0 : i32
    return %c0_i32, %arg0 : i32, i32
  }
  func.func @transform_3(%arg0: i32, %arg1: i32) -> (i32, i32) {
    %c0_i32 = arith.constant 0 : i32
    %c0_i32_0 = arith.constant 0 : i32
    return %c0_i32, %arg0 : i32, i32
  }
}

</mosaic_0001>

<bundles_post_ra>
// kernel: tpu_custom_call.1
= control target key start
LH: loop header
LB: loop body
LE: loop exit
PB: predicated region body
PF: predicated region fallthrough
CT: control target
= control target key end

     0   :  { %8 = vsyncpa [#allocation4], 0  ;;  %s408_s0 = inlined_call_operand.hbm [shape: bf16[8,128], index: 0, kind: input, shape index: {}]   ;;  %s409_s1 = inlined_call_operand.hbm [shape: bf16[128,128], index: 1, kind: input, shape index: {}]   ;;  %s410_s2 = inlined_call_operand.hbm [shape: f32[3,128], index: 2, kind: input, shape index: {}]   ;;  %s411_s3 = inlined_call_operand.hbm [shape: f32[8,128], index: 3, kind: output, shape index: {}]  }
   0x1   :  { %9 = vsyncpa [#allocation7], 0 }
   0x2   :  { %10 = vsyncpa [#allocation5], 0  ;;  %s368_s12 = smov [#allocation6]  }
   0x3   :  { %s26_s13 = sshll.u32 %s368_s12, 4  ;;  %s27_s13 = int_to_ptr.vmem [resolvable:$true] %s26_s13 }
   0x4   :  { %s290_s14 = scalar_lea.vmem %s27_s13, 1024  ;;  %p295_p1 = scmp.lt.s32.totalorder %s27_s13, %s27_s13 }
   0x5   :  { %p291_p0 = scmp.ne.s32.totalorder %s27_s13, %s290_s14  ;;  %p296_p2 = scmp.lt.s32.totalorder %s290_s14, %s290_s14 }
   0x7   :  { %p297_p3 = por %p296_p2, %p295_p1 }
   0x9   :  { %p298_p4 = pnand %p297_p3, %p291_p0 }
   0xb   :  { %301 = shalt.err (!%p298_p4)
}
   0xc   :  { %s369_s15 = smov 64   ;;  %s370_s16 = smov 4  }
   0xd   :  { %32 = dma.hbm_to_vmem [thread:$0]  %s409_s1, 1024, %s27_s13, [#allocation7], %s369_s15, %s369_s15, %s370_s16  }
   0xe   :  { %s371_s19 = smov [#allocation3]   ;;  %s372_s21 = smov [#allocation8]  }
   0xf   :  { %s17_s20 = sshll.u32 %s371_s19, 4  ;;  %s39_s22 = sshll.u32 %s372_s21, 4  ;;  %s18_s20 = int_to_ptr.vmem [resolvable:$true] %s17_s20  ;;  %s40_s22 = int_to_ptr.vmem [resolvable:$true] %s39_s22 }
  0x10   :  { %s310_s23 = scalar_lea.vmem %s18_s20, 64  ;;  %p315_p6 = scmp.lt.s32.totalorder %s18_s20, %s18_s20 }
  0x11   :  { %p311_p5 = scmp.ne.s32.totalorder %s18_s20, %s310_s23  ;;  %p316_p7 = scmp.lt.s32.totalorder %s310_s23, %s310_s23 }
  0x13   :  { %p317_p8 = por %p316_p7, %p315_p6 }
  0x15   :  { %p318_p9 = pnand %p317_p8, %p311_p5 }
  0x17   :  { %321 = shalt.err (!%p318_p9)
}
  0x18   :  { %20 = dma.hbm_to_vmem [thread:$0]  %s408_s0, 64, %s18_s20, [#allocation4]  }
  0x19   :  { %s330_s26 = scalar_lea.vmem %s40_s22, 64  ;;  %p335_p11 = scmp.lt.s32.totalorder %s40_s22, %s40_s22 }
  0x1a   :  { %p331_p10 = scmp.ne.s32.totalorder %s40_s22, %s330_s26  ;;  %p336_p12 = scmp.lt.s32.totalorder %s330_s26, %s330_s26 }
  0x1c   :  { %p337_p13 = por %p336_p12, %p335_p11 }
  0x1e   :  { %p338_p0 = pnand %p337_p13, %p331_p10 }
  0x20   :  { %341 = shalt.err (!%p338_p0)
}
  0x21   :  { %42 = dma.hbm_to_vmem [thread:$0]  %s410_s2, 64, %s40_s22, [#allocation7]  }
  0x22   :  { %362 = dma.done.wait [#allocation4], 64  }
  0x23   :  { %363 = vsyncadd [#allocation4], 4294967232 }
  0x24   :  { %364 = dma.done.wait [#allocation7], 1088  }
  0x25   :  { %365 = vsyncadd [#allocation7], 4294966208  ;;  %v373_v0 = vmov 0.0   ;;  %vm374_vm0 = vmmov 0   ;;  %v272_v1 = vld [vmem:[#allocation6 + $0x38] sm:$0xff]   ;;  %v273_v2 = vld [vmem:[#allocation6 + $0x30] sm:$0xff]   ;;  %v175_v10 = vlaneseq }
  0x26   :  { %244 = vmatprep.subr.bf16.mxu0 %v373_v0  ;;  %260 = vmatprep.mubr.msk.bf16.mxu0 %vm374_vm0, %v373_v0  ;;  %v274_v3 = vld [vmem:[#allocation6 + $0x28] sm:$0xff]   ;;  %v275_v4 = vld [vmem:[#allocation6 + $0x20] sm:$0xff]   ;;  %v276_v5 = vld [vmem:[#allocation6 + $0x18] sm:$0xff]   ;;  %s375_s0 = smov [#allocation9]  }
  0x27   :  { %245 = vmatpush3.bf16.msra.mxu0 %v272_v1  ;;  %v277_v6 = vld [vmem:[#allocation6 + $0x10] sm:$0xff]   ;;  %v278_v7 = vld [vmem:[#allocation6 + $0x8] sm:$0xff]   ;;  %v279_v8 = vld [vmem:[#allocation6] sm:$0xff]   ;;  %v176_v11 = vshrl.u32 %v175_v10, 7  ;;  %s217_s2 = sshll.u32 %s375_s0, 4  ;;  %s218_s2 = int_to_ptr.vmem [resolvable:$true] %s217_s2 }
  0x28   :  { %246 = vmatprep.subr.bf16.mxu0 %v373_v0  ;;  %v53_v9 = vld [vmem:[#allocation3] sm:$0xf]  ;;  %v173_v13 = vld [vmem:[#allocation8] sm:$0x7]  ;;  %s342_s28 = scalar_lea.vmem %s218_s2, 128  ;;  %p347_p2 = scmp.lt.s32.totalorder %s218_s2, %s218_s2 }
  0x29   :  { %v177_v12 = vsub.s32 0, %v176_v11  ;;  %v202_v38 = vsub.s32 1, %v176_v11  ;;  %v207_v39 = vsub.s32 2, %v176_v11  ;;  %p343_p1 = scmp.ne.s32.totalorder %s218_s2, %s342_s28  ;;  %p348_p3 = scmp.lt.s32.totalorder %s342_s28, %s342_s28 }
  0x2b   :  { %247 = vmatpush3.bf16.msra.mxu0 %v273_v2  ;;  %v178_v14 = vrot.slane %v173_v13, %v177_v12  ;;  %v203_v40 = vrot.slane %v173_v13, %v202_v38  ;;  %v208_v43 = vrot.slane %v173_v13, %v207_v39  ;;  %p349_p4 = por %p348_p3, %p347_p2 }
  0x2c   :  { %248 = vmatprep.subr.bf16.mxu0 %v373_v0 }
  0x2d   :  { %p350_p5 = pnand %p349_p4, %p343_p1 }
  0x2f   :  { %249 = vmatpush3.bf16.msra.mxu0 %v274_v3 }
  0x30   :  { %250 = vmatprep.subr.bf16.mxu0 %v373_v0 }
  0x33   :  { %251 = vmatpush3.bf16.msra.mxu0 %v275_v4 }
  0x34   :  { %252 = vmatprep.subr.bf16.mxu0 %v373_v0 }
  0x37   :  { %253 = vmatpush3.bf16.msra.mxu0 %v276_v5 }
  0x38   :  { %254 = vmatprep.subr.bf16.mxu0 %v373_v0 }
  0x3b   :  { %255 = vmatpush3.bf16.msra.mxu0 %v277_v6 }
  0x3c   :  { %256 = vmatprep.subr.bf16.mxu0 %v373_v0 }
  0x3f   :  { %257 = vmatpush3.bf16.msra.mxu0 %v278_v7 }
  0x40   :  { %258 = vmatprep.subr.bf16.mxu0 %v373_v0 }
  0x43   :  { %259 = vmatpush3.bf16.msra.mxu0 %v279_v8 }
  0x46   :  { %261 = vmatmul.mubr.bf16.vlgmr.msra.gmra.mxu0 %v53_v9 }
 0x106   :  { %v152_v15 = vpop.f32.mrf.mxu0 }
 0x107   :  { %v179_v16 = vadd.f32 %v178_v14, %v152_v15 }
 0x108   :  { %v262_v17 = vpop.f32.mrf.mxu0 }
 0x109   :  { %v180_v18 = vmax.f32 %v179_v16, 0.0 }
 0x10a   :  { %v155_v19 = vpop.f32.mrf.mxu0 }
 0x10b   :  { %v181_v20 = vrot.slane %v180_v18, 4 }
 0x10c   :  { %v263_v21 = vpop.f32.mrf.mxu0 }
 0x10d   :  { %v182_v22 = vadd.f32 %v181_v20, %v180_v18 }
 0x10f   :  { %v183_v23 = vrot.slane %v182_v22, 2 }
 0x111   :  { %v184_v24 = vadd.f32 %v183_v23, %v182_v22 }
 0x113   :  { %v185_v25 = vrot.slane %v184_v24, 1 }
 0x115   :  { %v186_v26 = vadd.f32 %v185_v25, %v184_v24 }
 0x117   :  { %v187_v27 = vmul.f32 0.125, %v186_v26 }
 0x119   :  { %v188_v28 = vsub.f32 %v180_v18, %v187_v27 }
 0x11b   :  { %v189_v29 = vmul.f32 %v188_v28, %v188_v28 }
 0x11d   :  { %v190_v30 = vrot.slane %v189_v29, 4 }
 0x11f   :  { %v191_v31 = vadd.f32 %v190_v30, %v189_v29 }
 0x121   :  { %v192_v32 = vrot.slane %v191_v31, 2 }
 0x123   :  { %v193_v33 = vadd.f32 %v192_v32, %v191_v31 }
 0x125   :  { %v194_v34 = vrot.slane %v193_v33, 1 }
 0x127   :  { %v195_v35 = vadd.f32 %v194_v34, %v193_v33 }
 0x129   :  { %v196_v36 = vmul.f32 0.125, %v195_v35 }
 0x12b   :  { %v197_v37 = vadd.f32 1e-05, %v196_v36 }
 0x12d   :  { %280 = vrsqrt.f32 %v197_v37 }
 0x13a   :  { %v281_v41 = vpop.eup %280 }
 0x13b   :  { %v199_v42 = vmul.f32 %v281_v41, %v188_v28 }
 0x13d   :  { %v204_v44 = vmul.f32 %v203_v40, %v199_v42 }
 0x13f   :  { %v209_v45 = vadd.f32 %v208_v43, %v204_v44 }
 0x141   :  { %210 = vst [vmem:[#allocation9] sm:$0xff] %v209_v45 }
 0x142   :  { %353 = shalt.err (!%p350_p5)
}
 0x143   :  { %220 = dma.vmem_to_hbm [thread:$0]  %s218_s2, 128, %s411_s3, [#allocation5]  }
 0x144   :  { %366 = dma.done.wait [#allocation5], 128  }
 0x145   :  { %367 = vsyncadd [#allocation5], 4294967168 }
 0x146   :  { %224 = vsyncpa [#allocation4], 1 }
 0x147   :  { %225 = vsyncpa [#allocation7], 1 }
 0x148   :  { %226 = vsyncpa [#allocation5], 1 }

</bundles_post_ra>
